<compile_context>
chip_gen: v6e
topology: v6e:2x2x1
jax: 0.10.0
libtpu: 0.0.40
codegen_flags: <defaults>
</compile_context>

<pallas_src>
import jax
import jax.numpy as jnp
from jax.experimental import pallas as pl
from jax.experimental.pallas import tpu as pltpu


def _round_up(a, m):
    return ((a + m - 1) // m) * m


def _mlp_kernel(x_ref, y_ref,
                w1x_ref, w1y_ref, b1_ref,
                w2_ref, b2_ref,
                w3_ref, b3_ref,
                o_ref):
    # Layer 1: concat(x, y) @ W1  ==  x @ W1x + y @ W1y   (matmul distributes
    # over the feature concat -> no in-kernel concat / VMEM copy).
    h1 = jnp.dot(x_ref[...], w1x_ref[...], preferred_element_type=jnp.float32)
    h1 = h1 + jnp.dot(y_ref[...], w1y_ref[...],
                      preferred_element_type=jnp.float32)
    h1 = jnp.maximum(h1 + b1_ref[...], 0.0).astype(jnp.bfloat16)

    # Layer 2: Linear + ReLU (f32 accumulate, bf16 feed-forward).
    h2 = jnp.dot(h1, w2_ref[...], preferred_element_type=jnp.float32) + b2_ref[...]
    h2 = jnp.maximum(h2, 0.0).astype(jnp.bfloat16)

    # attend: Linear (no activation), f32 output (lane-dense padded N).
    o_ref[...] = (jnp.dot(h2, w3_ref[...], preferred_element_type=jnp.float32)
                  + b3_ref[...]).astype(o_ref.dtype)


def nn_forward(x, y, params, *, batch_tile=512):
    """Pallas implementation of NN.forward (depth=2).

    x: (B, Fx) f32, y: (B, Fy) f32 with Fx + Fy == n_feature.
    params: dict with w1 (F, H), b1 (1, H), w2 (H, 2H), b2 (1, 2H),
            w3 (2H, O), b3 (1, O)  -- weights already transposed to (in, out).
    """
    B, FX = x.shape
    _, FY = y.shape
    H = params["w1"].shape[1]
    H2 = params["w2"].shape[1]
    O = params["w3"].shape[1]
    assert params["w1"].shape[0] == FX + FY

    # Lane-dense padded feature dims (multiples of 128).
    FXp = _round_up(FX, 128)
    FYp = _round_up(FY, 128)
    Hp = _round_up(H, 128)
    H2p = _round_up(H2, 128)
    Op = _round_up(O, 128)

    # Batch tiling: pad the tail rather than shrinking the steady-state tile.
    Bp = _round_up(B, 16)
    if Bp <= batch_tile:
        TB = Bp                      # single block covering the full (padded) batch
    else:
        TB = batch_tile
        Bp = _round_up(B, TB)
    grid = (Bp // TB,)

    def pad2(a, rows, cols):
        return jnp.pad(a, ((0, rows - a.shape[0]), (0, cols - a.shape[1])))

    # Activations: zero-padded, bf16.
    xp = pad2(x, Bp, FXp).astype(jnp.bfloat16)
    yp = pad2(y, Bp, FYp).astype(jnp.bfloat16)

    # Weights: split W1 into x/y halves, zero-pad, bf16. Biases stay f32
    # (added after the f32 accumulation).
    w1 = params["w1"]
    w1x = pad2(w1[:FX, :], FXp, Hp).astype(jnp.bfloat16)
    w1y = pad2(w1[FX:, :], FYp, Hp).astype(jnp.bfloat16)
    b1 = pad2(params["b1"], 1, Hp).astype(jnp.float32)
    w2 = pad2(params["w2"], Hp, H2p).astype(jnp.bfloat16)
    b2 = pad2(params["b2"], 1, H2p).astype(jnp.float32)
    w3 = pad2(params["w3"], H2p, Op).astype(jnp.bfloat16)
    b3 = pad2(params["b3"], 1, Op).astype(jnp.float32)

    def resident(shape):
        # Constant block index across the batch grid -> stays in VMEM.
        return pl.BlockSpec(shape, lambda i: (0, 0))

    in_specs = [
        pl.BlockSpec((TB, FXp), lambda i: (i, 0)),   # x tile (pipelined)
        pl.BlockSpec((TB, FYp), lambda i: (i, 0)),   # y tile (pipelined)
        resident((FXp, Hp)),                          # w1x
        resident((FYp, Hp)),                          # w1y
        resident((1, Hp)),                            # b1
        resident((Hp, H2p)),                          # w2
        resident((1, H2p)),                           # b2
        resident((H2p, Op)),                          # w3
        resident((1, Op)),                            # b3
    ]
    out_specs = pl.BlockSpec((TB, Op), lambda i: (i, 0))

    weight_elems = FXp * Hp + FYp * Hp + Hp * H2p + H2p * Op
    flops = 2 * Bp * (FXp * Hp + FYp * Hp + Hp * H2p + H2p * Op)
    bytes_accessed = (
        Bp * (FXp + FYp) * 2      # bf16 activations streamed in
        + Bp * Op * 4             # f32 output streamed out
        + weight_elems * 2        # bf16 weights (resident, read once)
        + (Hp + H2p + Op) * 4     # f32 biases
    )

    out_padded = pl.pallas_call(
        _mlp_kernel,
        out_shape=jax.ShapeDtypeStruct((Bp, Op), jnp.float32),
        grid=grid,
        in_specs=in_specs,
        out_specs=out_specs,
        compiler_params=pltpu.CompilerParams(
            dimension_semantics=("parallel",)),
        cost_estimate=pl.CostEstimate(
            flops=flops, transcendentals=0, bytes_accessed=bytes_accessed),
    )(xp, yp, w1x, w1y, b1, w2, b2, w3, b3)

    # Strip batch / output-feature padding.
    return out_padded[:B, :O]


def init_params(key, n_feature, n_hidden, n_output):
    """Deterministic init mimicking nn.Linear default (uniform(-1/sqrt(in), 1/sqrt(in)))."""
    def linear(k, fan_in, fan_out):
        kw, kb = jax.random.split(k)
        bound = 1.0 / jnp.sqrt(float(fan_in))
        # stored pre-transposed: (in, out)
        w = jax.random.uniform(kw, (fan_in, fan_out), jnp.float32, -bound, bound)
        b = jax.random.uniform(kb, (1, fan_out), jnp.float32, -bound, bound)
        return w, b

    k1, k2, k3 = jax.random.split(key, 3)
    w1, b1 = linear(k1, n_feature, n_hidden)          # Linear(n_feature, n_hidden)
    w2, b2 = linear(k2, n_hidden, 2 * n_hidden)       # Linear(n_hidden, 2*n_hidden)
    w3, b3 = linear(k3, 2 * n_hidden, n_output)       # attend: Linear(2*n_hidden, n_output)
    return dict(w1=w1, b1=b1, w2=w2, b2=b2, w3=w3, b3=b3)


def reference_forward(x, y, p):
    """Plain-JAX f32 reference for correctness check."""
    xy = jnp.concatenate([x, y], axis=-1)
    h1 = jnp.maximum(xy @ p["w1"] + p["b1"], 0.0)
    h2 = jnp.maximum(h1 @ p["w2"] + p["b2"], 0.0)
    return h2 @ p["w3"] + p["b3"]


if __name__ == "__main__":
    # Small shapes: batch=8, x/y each contribute 16 features -> n_feature=32,
    # n_hidden=32, n_output=8, depth=2.
    B, FX, FY = 8, 16, 16
    N_FEATURE = FX + FY
    N_HIDDEN = 32
    N_OUTPUT = 8

    key = jax.random.PRNGKey(0)
    kx, ky, kp = jax.random.split(key, 3)
    x = jax.random.normal(kx, (B, FX), jnp.float32)
    y = jax.random.normal(ky, (B, FY), jnp.float32)
    params = init_params(kp, N_FEATURE, N_HIDDEN, N_OUTPUT)

    out = nn_forward(x, y, params)
    out = jax.block_until_ready(out)

    ref = reference_forward(x, y, params)
    assert out.shape == (B, N_OUTPUT), out.shape
    # bf16 operands / f32 accumulation -> loosened tolerance vs f32 reference.
    assert jnp.allclose(out, ref, atol=5e-2, rtol=5e-2), "mismatch vs reference"

    print("KERNEL_OK")
</pallas_src>

<mosaic_0001>
module attributes {stable_mosaic.version = 11 : i64} {
  func.func @_mlp_kernel(%arg0: i32, %arg1: memref<16x128xbf16, #tpu.memory_space<vmem>>, %arg2: memref<16x128xbf16, #tpu.memory_space<vmem>>, %arg3: memref<128x128xbf16, #tpu.memory_space<vmem>>, %arg4: memref<128x128xbf16, #tpu.memory_space<vmem>>, %arg5: memref<1x128xf32, #tpu.memory_space<vmem>>, %arg6: memref<128x128xbf16, #tpu.memory_space<vmem>>, %arg7: memref<1x128xf32, #tpu.memory_space<vmem>>, %arg8: memref<128x128xbf16, #tpu.memory_space<vmem>>, %arg9: memref<1x128xf32, #tpu.memory_space<vmem>>, %arg10: memref<16x128xf32, #tpu.memory_space<vmem>>) attributes {dimension_semantics = [#tpu.dimension_semantics<parallel>], iteration_bounds = array<i64: 1>, scalar_prefetch = 0 : i64, scratch_operands = 0 : i64, tpu.core_type = #tpu.core_type<tc>, window_params = [{transform_indices = @transform_0, window_bounds = array<i64: 16, 128>}, {transform_indices = @transform_1, window_bounds = array<i64: 16, 128>}, {pipeline_mode = #tpu.pipeline_mode<synchronous>, transform_indices = @transform_2, window_bounds = array<i64: 128, 128>}, {pipeline_mode = #tpu.pipeline_mode<synchronous>, transform_indices = @transform_3, window_bounds = array<i64: 128, 128>}, {pipeline_mode = #tpu.pipeline_mode<synchronous>, transform_indices = @transform_4, window_bounds = array<i64: 1, 128>}, {pipeline_mode = #tpu.pipeline_mode<synchronous>, transform_indices = @transform_5, window_bounds = array<i64: 128, 128>}, {pipeline_mode = #tpu.pipeline_mode<synchronous>, transform_indices = @transform_6, window_bounds = array<i64: 1, 128>}, {pipeline_mode = #tpu.pipeline_mode<synchronous>, transform_indices = @transform_7, window_bounds = array<i64: 128, 128>}, {pipeline_mode = #tpu.pipeline_mode<synchronous>, transform_indices = @transform_8, window_bounds = array<i64: 1, 128>}, {transform_indices = @transform_9, window_bounds = array<i64: 16, 128>}]} {
    %c0 = arith.constant 0 : index
    %c0_0 = arith.constant 0 : index
    %0 = vector.load %arg1[%c0, %c0_0] : memref<16x128xbf16, #tpu.memory_space<vmem>>, vector<16x128xbf16>
    %c0_1 = arith.constant 0 : index
    %c0_2 = arith.constant 0 : index
    %1 = vector.load %arg3[%c0_1, %c0_2] : memref<128x128xbf16, #tpu.memory_space<vmem>>, vector<128x128xbf16>
    %cst = arith.constant dense<0.000000e+00> : vector<16x128xf32>
    %2 = tpu.matmul %0, %1, %cst {dimension_numbers = #tpu.dot_dimension_numbers<[1], [0], [0], [1], [0, 0, 1, 1], [], []>} : vector<16x128xbf16>, vector<128x128xbf16>, vector<16x128xf32> -> vector<16x128xf32>
    %c0_3 = arith.constant 0 : index
    %c0_4 = arith.constant 0 : index
    %3 = vector.load %arg2[%c0_3, %c0_4] : memref<16x128xbf16, #tpu.memory_space<vmem>>, vector<16x128xbf16>
    %c0_5 = arith.constant 0 : index
    %c0_6 = arith.constant 0 : index
    %4 = vector.load %arg4[%c0_5, %c0_6] : memref<128x128xbf16, #tpu.memory_space<vmem>>, vector<128x128xbf16>
    %cst_7 = arith.constant dense<0.000000e+00> : vector<16x128xf32>
    %5 = tpu.matmul %3, %4, %cst_7 {dimension_numbers = #tpu.dot_dimension_numbers<[1], [0], [0], [1], [0, 0, 1, 1], [], []>} : vector<16x128xbf16>, vector<128x128xbf16>, vector<16x128xf32> -> vector<16x128xf32>
    %6 = arith.addf %2, %5 : vector<16x128xf32>
    %c0_8 = arith.constant 0 : index
    %c0_9 = arith.constant 0 : index
    %7 = vector.load %arg5[%c0_8, %c0_9] : memref<1x128xf32, #tpu.memory_space<vmem>>, vector<1x128xf32>
    %8 = vector.broadcast %7 : vector<1x128xf32> to vector<16x128xf32>
    %9 = arith.addf %6, %8 : vector<16x128xf32>
    %cst_10 = arith.constant 0.000000e+00 : f32
    %10 = vector.broadcast %cst_10 : f32 to vector<16x128xf32>
    %11 = arith.maximumf %9, %10 : vector<16x128xf32>
    %12 = arith.truncf %11 : vector<16x128xf32> to vector<16x128xbf16>
    %c0_11 = arith.constant 0 : index
    %c0_12 = arith.constant 0 : index
    %13 = vector.load %arg6[%c0_11, %c0_12] : memref<128x128xbf16, #tpu.memory_space<vmem>>, vector<128x128xbf16>
    %cst_13 = arith.constant dense<0.000000e+00> : vector<16x128xf32>
    %14 = tpu.matmul %12, %13, %cst_13 {dimension_numbers = #tpu.dot_dimension_numbers<[1], [0], [0], [1], [0, 0, 1, 1], [], []>} : vector<16x128xbf16>, vector<128x128xbf16>, vector<16x128xf32> -> vector<16x128xf32>
    %c0_14 = arith.constant 0 : index
    %c0_15 = arith.constant 0 : index
    %15 = vector.load %arg7[%c0_14, %c0_15] : memref<1x128xf32, #tpu.memory_space<vmem>>, vector<1x128xf32>
    %16 = vector.broadcast %15 : vector<1x128xf32> to vector<16x128xf32>
    %17 = arith.addf %14, %16 : vector<16x128xf32>
    %cst_16 = arith.constant 0.000000e+00 : f32
    %18 = vector.broadcast %cst_16 : f32 to vector<16x128xf32>
    %19 = arith.maximumf %17, %18 : vector<16x128xf32>
    %20 = arith.truncf %19 : vector<16x128xf32> to vector<16x128xbf16>
    %c0_17 = arith.constant 0 : index
    %c0_18 = arith.constant 0 : index
    %21 = vector.load %arg8[%c0_17, %c0_18] : memref<128x128xbf16, #tpu.memory_space<vmem>>, vector<128x128xbf16>
    %cst_19 = arith.constant dense<0.000000e+00> : vector<16x128xf32>
    %22 = tpu.matmul %20, %21, %cst_19 {dimension_numbers = #tpu.dot_dimension_numbers<[1], [0], [0], [1], [0, 0, 1, 1], [], []>} : vector<16x128xbf16>, vector<128x128xbf16>, vector<16x128xf32> -> vector<16x128xf32>
    %c0_20 = arith.constant 0 : index
    %c0_21 = arith.constant 0 : index
    %23 = vector.load %arg9[%c0_20, %c0_21] : memref<1x128xf32, #tpu.memory_space<vmem>>, vector<1x128xf32>
    %24 = vector.broadcast %23 : vector<1x128xf32> to vector<16x128xf32>
    %25 = arith.addf %22, %24 : vector<16x128xf32>
    %c0_22 = arith.constant 0 : index
    %c0_23 = arith.constant 0 : index
    %26 = vector.load %arg10[%c0_22, %c0_23] : memref<16x128xf32, #tpu.memory_space<vmem>>, vector<16x128xf32>
    tpu.vector_store %arg10[%c0_22, %c0_23], %25 {strides = array<i32>} : memref<16x128xf32, #tpu.memory_space<vmem>>, vector<16x128xf32>,
    return
  }
  func.func @transform_0(%arg0: i32) -> (i32, i32) {
    %c0_i32 = arith.constant 0 : i32
    %c0_i32_0 = arith.constant 0 : i32
    return %arg0, %c0_i32 : i32, i32
  }
  func.func @transform_1(%arg0: i32) -> (i32, i32) {
    %c0_i32 = arith.constant 0 : i32
    %c0_i32_0 = arith.constant 0 : i32
    return %arg0, %c0_i32 : i32, i32
  }
  func.func @transform_2(%arg0: i32) -> (i32, i32) {
    %c0_i32 = arith.constant 0 : i32
    %c0_i32_0 = arith.constant 0 : i32
    %c0_i32_1 = arith.constant 0 : i32
    return %c0_i32, %c0_i32_0 : i32, i32
  }
  func.func @transform_3(%arg0: i32) -> (i32, i32) {
    %c0_i32 = arith.constant 0 : i32
    %c0_i32_0 = arith.constant 0 : i32
    %c0_i32_1 = arith.constant 0 : i32
    return %c0_i32, %c0_i32_0 : i32, i32
  }
  func.func @transform_4(%arg0: i32) -> (i32, i32) {
    %c0_i32 = arith.constant 0 : i32
    %c0_i32_0 = arith.constant 0 : i32
    %c0_i32_1 = arith.constant 0 : i32
    return %c0_i32, %c0_i32_0 : i32, i32
  }
  func.func @transform_5(%arg0: i32) -> (i32, i32) {
    %c0_i32 = arith.constant 0 : i32
    %c0_i32_0 = arith.constant 0 : i32
    %c0_i32_1 = arith.constant 0 : i32
    return %c0_i32, %c0_i32_0 : i32, i32
  }
  func.func @transform_6(%arg0: i32) -> (i32, i32) {
    %c0_i32 = arith.constant 0 : i32
    %c0_i32_0 = arith.constant 0 : i32
    %c0_i32_1 = arith.constant 0 : i32
    return %c0_i32, %c0_i32_0 : i32, i32
  }
  func.func @transform_7(%arg0: i32) -> (i32, i32) {
    %c0_i32 = arith.constant 0 : i32
    %c0_i32_0 = arith.constant 0 : i32
    %c0_i32_1 = arith.constant 0 : i32
    return %c0_i32, %c0_i32_0 : i32, i32
  }
  func.func @transform_8(%arg0: i32) -> (i32, i32) {
    %c0_i32 = arith.constant 0 : i32
    %c0_i32_0 = arith.constant 0 : i32
    %c0_i32_1 = arith.constant 0 : i32
    return %c0_i32, %c0_i32_0 : i32, i32
  }
  func.func @transform_9(%arg0: i32) -> (i32, i32) {
    %c0_i32 = arith.constant 0 : i32
    %c0_i32_0 = arith.constant 0 : i32
    return %arg0, %c0_i32 : i32, i32
  }
}

</mosaic_0001>

<bundles_post_ra>
// kernel: tpu_custom_call.1
= control target key start
LH: loop header
LB: loop body
LE: loop exit
PB: predicated region body
PF: predicated region fallthrough
CT: control target
= control target key end

     0   :  { %14 = vsyncpa [#allocation3], 0  ;;  %s1104_s0 = inlined_call_operand.hbm [shape: bf16[16,128], index: 0, kind: input, shape index: {}]   ;;  %s1105_s1 = inlined_call_operand.hbm [shape: bf16[16,128], index: 1, kind: input, shape index: {}]   ;;  %s1106_s2 = inlined_call_operand.hbm [shape: bf16[128,128], index: 2, kind: input, shape index: {}]   ;;  %s1107_s3 = inlined_call_operand.hbm [shape: bf16[128,128], index: 3, kind: input, shape index: {}]   ;;  %s1108_s4 = inlined_call_operand.vmem [shape: f32[1,128], index: 4, kind: input, shape index: {}]   ;;  %s1109_s5 = inlined_call_operand.hbm [shape: bf16[128,128], index: 5, kind: input, shape index: {}]   ;;  %s1110_s6 = inlined_call_operand.vmem [shape: f32[1,128], index: 6, kind: input, shape index: {}]   ;;  %s1111_s7 = inlined_call_operand.hbm [shape: bf16[128,128], index: 7, kind: input, shape index: {}]   ;;  %s1112_s8 = inlined_call_operand.vmem [shape: f32[1,128], index: 8, kind: input, shape index: {}]   ;;  %s1113_s9 = inlined_call_operand.hbm [shape: f32[16,128], index: 9, kind: output, shape index: {}]  }
   0x1   :  { %15 = vsyncpa [#allocation6], 0 }
   0x2   :  { %16 = vsyncpa [#allocation9], 0 }
   0x3   :  { %17 = vsyncpa [#allocation12], 0 }
   0x4   :  { %18 = vsyncpa [#allocation4], 0  ;;  %s953_s30 = smov [#allocation5]   ;;  %s954_s11 = smov [#allocation8]  }
   0x5   :  { %s36_s10 = sshll.u32 %s953_s30, 4  ;;  %s60_s12 = sshll.u32 %s954_s11, 4  ;;  %s37_s10 = int_to_ptr.vmem [resolvable:$true] %s36_s10  ;;  %s61_s12 = int_to_ptr.vmem [resolvable:$true] %s60_s12 }
   0x6   :  { %s811_s13 = scalar_lea.vmem %s37_s10, 128  ;;  %p816_p1 = scmp.lt.s32.totalorder %s37_s10, %s37_s10 }
   0x7   :  { %p812_p0 = scmp.ne.s32.totalorder %s37_s10, %s811_s13  ;;  %p817_p2 = scmp.lt.s32.totalorder %s811_s13, %s811_s13 }
   0x9   :  { %p818_p3 = por %p817_p2, %p816_p1 }
   0xb   :  { %p819_p4 = pnand %p818_p3, %p812_p0 }
   0xd   :  { %822 = shalt.err (!%p819_p4)
}
   0xe   :  { %s955_s14 = smov 64   ;;  %s956_s15 = smov 4  }
   0xf   :  { %42 = dma.hbm_to_vmem [thread:$0]  %s1105_s1, 128, %s37_s10, [#allocation6], %s955_s14, %s955_s14, %s956_s15  }
  0x10   :  { %s831_s18 = scalar_lea.vmem %s61_s12, 1024  ;;  %p836_p6 = scmp.lt.s32.totalorder %s61_s12, %s61_s12 }
  0x11   :  { %p832_p5 = scmp.ne.s32.totalorder %s61_s12, %s831_s18  ;;  %p837_p7 = scmp.lt.s32.totalorder %s831_s18, %s831_s18 }
  0x13   :  { %p838_p8 = por %p837_p7, %p836_p6 }
  0x15   :  { %p839_p9 = pnand %p838_p8, %p832_p5 }
  0x17   :  { %842 = shalt.err (!%p839_p9)
}
  0x18   :  { %66 = dma.hbm_to_vmem [thread:$0]  %s1107_s3, 1024, %s61_s12, [#allocation9], %s955_s14, %s955_s14, %s956_s15  }
  0x19   :  { %s957_s21 = smov [#allocation2]   ;;  %s958_s23 = smov [#allocation7]  }
  0x1a   :  { %s24_s22 = sshll.u32 %s957_s21, 4  ;;  %s48_s24 = sshll.u32 %s958_s23, 4  ;;  %s25_s22 = int_to_ptr.vmem [resolvable:$true] %s24_s22  ;;  %s49_s24 = int_to_ptr.vmem [resolvable:$true] %s48_s24 }
  0x1b   :  { %s851_s1 = scalar_lea.vmem %s25_s22, 128  ;;  %p856_p11 = scmp.lt.s32.totalorder %s25_s22, %s25_s22 }
  0x1c   :  { %p852_p10 = scmp.ne.s32.totalorder %s25_s22, %s851_s1  ;;  %p857_p12 = scmp.lt.s32.totalorder %s851_s1, %s851_s1 }
  0x1e   :  { %p858_p13 = por %p857_p12, %p856_p11 }
  0x20   :  { %p859_p0 = pnand %p858_p13, %p852_p10 }
  0x22   :  { %862 = shalt.err (!%p859_p0)
}
  0x23   :  { %30 = dma.hbm_to_vmem [thread:$0]  %s1104_s0, 128, %s25_s22, [#allocation3], %s955_s14, %s955_s14, %s956_s15  }
  0x24   :  { %s871_s3 = scalar_lea.vmem %s49_s24, 1024  ;;  %p876_p2 = scmp.lt.s32.totalorder %s49_s24, %s49_s24 }
  0x25   :  { %p872_p1 = scmp.ne.s32.totalorder %s49_s24, %s871_s3  ;;  %p877_p3 = scmp.lt.s32.totalorder %s871_s3, %s871_s3 }
  0x27   :  { %p878_p4 = por %p877_p3, %p876_p2 }
  0x29   :  { %p879_p5 = pnand %p878_p4, %p872_p1 }
  0x2b   :  { %882 = shalt.err (!%p879_p5)
}
  0x2c   :  { %54 = dma.hbm_to_vmem [thread:$0]  %s1106_s2, 1024, %s49_s24, [#allocation6], %s955_s14, %s955_s14, %s956_s15  }
  0x2d   :  { %s959_s29 = smov [#allocation10]   ;;  %s960_s10 = smov [#allocation11]  }
  0x2e   :  { %s74_s30 = sshll.u32 %s959_s29, 4  ;;  %s88_s11 = sshll.u32 %s960_s10, 4  ;;  %s75_s30 = int_to_ptr.vmem [resolvable:$true] %s74_s30  ;;  %s89_s11 = int_to_ptr.vmem [resolvable:$true] %s88_s11 }
  0x2f   :  { %s891_s0 = scalar_lea.vmem %s75_s30, 1024  ;;  %p896_p7 = scmp.lt.s32.totalorder %s75_s30, %s75_s30 }
  0x30   :  { %p892_p6 = scmp.ne.s32.totalorder %s75_s30, %s891_s0  ;;  %p897_p8 = scmp.lt.s32.totalorder %s891_s0, %s891_s0 }
  0x32   :  { %p898_p9 = por %p897_p8, %p896_p7 }
  0x34   :  { %p899_p10 = pnand %p898_p9, %p892_p6 }
  0x36   :  { %902 = shalt.err (!%p899_p10)
}
  0x37   :  { %80 = dma.hbm_to_vmem [thread:$0]  %s1109_s5, 1024, %s75_s30, [#allocation9], %s955_s14, %s955_s14, %s956_s15  }
  0x38   :  { %s911_s2 = scalar_lea.vmem %s89_s11, 1024  ;;  %p916_p12 = scmp.lt.s32.totalorder %s89_s11, %s89_s11 }
  0x39   :  { %p912_p11 = scmp.ne.s32.totalorder %s89_s11, %s911_s2  ;;  %p917_p13 = scmp.lt.s32.totalorder %s911_s2, %s911_s2 }
  0x3b   :  { %p918_p0 = por %p917_p13, %p916_p12 }
  0x3d   :  { %p919_p1 = pnand %p918_p0, %p912_p11 }
  0x3f   :  { %922 = shalt.err (!%p919_p1)
}
  0x40   :  { %94 = dma.hbm_to_vmem [thread:$0]  %s1111_s7, 1024, %s89_s11, [#allocation12], %s955_s14, %s955_s14, %s956_s15  }
  0x41   :  { %943 = dma.done.wait [#allocation3], 128  }
  0x42   :  { %944 = vsyncadd [#allocation3], 4294967168 }
  0x43   :  { %945 = dma.done.wait [#allocation6], 1152  }
  0x44   :  { %946 = vsyncadd [#allocation6], 4294966144 }
  0x45   :  { %947 = dma.done.wait [#allocation9], 2048  }
  0x46   :  { %948 = vsyncadd [#allocation9], 4294965248 }
  0x47   :  { %949 = dma.done.wait [#allocation12], 1024  }
  0x48   :  { %950 = vsyncadd [#allocation12], 4294966272  ;;  %v961_v0 = vmov 0.0   ;;  %vm962_vm0 = vmmov 0   ;;  %v769_v1 = vld [vmem:[#allocation8 + $0x38] sm:$0xff]   ;;  %v771_v3 = vld [vmem:[#allocation8 + $0x30] sm:$0xff]  }
  0x49   :  { %676 = vmatprep.subr.bf16.mxu0 %v961_v0  ;;  %696 = vmatprep.subr.bf16.mxu1 %v961_v0  ;;  %v770_v2 = vld [vmem:[#allocation7 + $0x38] sm:$0xff]   ;;  %v772_v4 = vld [vmem:[#allocation7 + $0x30] sm:$0xff]   ;;  %v773_v5 = vld [vmem:[#allocation8 + $0x28] sm:$0xff]   ;;  %s963_s19 = smov [#allocation13]  }
  0x4a   :  { %692 = vmatprep.mubr.msk.bf16.mxu0 %vm962_vm0, %v961_v0  ;;  %712 = vmatprep.mubr.msk.bf16.mxu1 %vm962_vm0, %v961_v0  ;;  %v774_v6 = vld [vmem:[#allocation7 + $0x28] sm:$0xff]   ;;  %v775_v7 = vld [vmem:[#allocation8 + $0x20] sm:$0xff]   ;;  %v777_v9 = vld [vmem:[#allocation8 + $0x18] sm:$0xff]   ;;  %s588_s20 = sshll.u32 %s963_s19, 4  ;;  %s589_s20 = int_to_ptr.vmem [resolvable:$true] %s588_s20 }
  0x4b   :  { %677 = vmatpush3.bf16.msra.mxu0 %v769_v1  ;;  %697 = vmatpush3.bf16.msra.mxu1 %v770_v2  ;;  %v776_v8 = vld [vmem:[#allocation7 + $0x20] sm:$0xff]   ;;  %v778_v10 = vld [vmem:[#allocation7 + $0x18] sm:$0xff]   ;;  %v779_v11 = vld [vmem:[#allocation8 + $0x10] sm:$0xff]   ;;  %p928_p3 = scmp.lt.s32.totalorder %s589_s20, %s589_s20 }
  0x4c   :  { %678 = vmatprep.subr.bf16.mxu0 %v961_v0  ;;  %698 = vmatprep.subr.bf16.mxu1 %v961_v0  ;;  %v780_v12 = vld [vmem:[#allocation7 + $0x10] sm:$0xff]   ;;  %v781_v13 = vld [vmem:[#allocation8 + $0x8] sm:$0xff]   ;;  %v783_v15 = vld [vmem:[#allocation8] sm:$0xff]  }
  0x4d   :  { %v782_v14 = vld [vmem:[#allocation7 + $0x8] sm:$0xff]   ;;  %v784_v16 = vld [vmem:[#allocation7] sm:$0xff]   ;;  %v785_v17 = vld [vmem:[#allocation5] sm:$0xff]  }
  0x4e   :  { %v786_v18 = vld [vmem:[#allocation2] sm:$0xff]   ;;  %v787_v19 = vld [vmem:[#allocation10 + $0x38] sm:$0xff]   ;;  %v789_v21 = vld [vmem:[#allocation10 + $0x28] sm:$0xff]  }
  0x4f   :  { %679 = vmatpush3.bf16.msra.mxu0 %v771_v3  ;;  %699 = vmatpush3.bf16.msra.mxu1 %v772_v4  ;;  %v788_v20 = vld [vmem:[#allocation10 + $0x30] sm:$0xff]   ;;  %v790_v22 = vld [vmem:[#allocation10 + $0x20] sm:$0xff]   ;;  %v791_v23 = vld [vmem:[#allocation10 + $0x18] sm:$0xff]  }
  0x50   :  { %680 = vmatprep.subr.bf16.mxu0 %v961_v0  ;;  %700 = vmatprep.subr.bf16.mxu1 %v961_v0  ;;  %v792_v24 = vld [vmem:[#allocation10 + $0x10] sm:$0xff]   ;;  %v793_v25 = vld [vmem:[#allocation10 + $0x8] sm:$0xff]   ;;  %v794_v26 = vld [vmem:[#allocation10] sm:$0xff]  }
  0x51   :  { %v795_v27 = vld [vmem:[#allocation11 + $0x38] sm:$0xff]   ;;  %v796_v28 = vld [vmem:[#allocation11 + $0x30] sm:$0xff]   ;;  %v797_v29 = vld [vmem:[#allocation11 + $0x28] sm:$0xff]  }
  0x52   :  { %v798_v30 = vld [vmem:[#allocation11 + $0x20] sm:$0xff]   ;;  %v799_v31 = vld [vmem:[#allocation11 + $0x18] sm:$0xff]   ;;  %v621_v36 = vld [vmem:[%s1108_s4] ss:$0 sm:$0xff] }
  0x53   :  { %681 = vmatpush3.bf16.msra.mxu0 %v773_v5  ;;  %701 = vmatpush3.bf16.msra.mxu1 %v774_v6  ;;  %v800_v48 = vld [vmem:[#allocation11 + $0x10] sm:$0xff]   ;;  %v801_v49 = vld [vmem:[#allocation11 + $0x8] sm:$0xff]   ;;  %v802_v50 = vld [vmem:[#allocation11] sm:$0xff]  }
  0x54   :  { %682 = vmatprep.subr.bf16.mxu0 %v961_v0  ;;  %702 = vmatprep.subr.bf16.mxu1 %v961_v0  ;;  %v622_v51 = vld [vmem:[%s1110_s6] ss:$0 sm:$0xff]  ;;  %s923_s6 = scalar_lea.vmem %s589_s20, 256 }
  0x55   :  { %v631_v61 = vld [vmem:[%s1112_s8] ss:$0 sm:$0xff]  ;;  %p924_p2 = scmp.ne.s32.totalorder %s589_s20, %s923_s6  ;;  %p929_p4 = scmp.lt.s32.totalorder %s923_s6, %s923_s6 }
  0x57   :  { %683 = vmatpush3.bf16.msra.mxu0 %v775_v7  ;;  %703 = vmatpush3.bf16.msra.mxu1 %v776_v8  ;;  %p930_p5 = por %p929_p4, %p928_p3 }
  0x58   :  { %684 = vmatprep.subr.bf16.mxu0 %v961_v0  ;;  %704 = vmatprep.subr.bf16.mxu1 %v961_v0 }
  0x59   :  { %p931_p6 = pnand %p930_p5, %p924_p2 }
  0x5b   :  { %685 = vmatpush3.bf16.msra.mxu0 %v777_v9  ;;  %705 = vmatpush3.bf16.msra.mxu1 %v778_v10 }
  0x5c   :  { %686 = vmatprep.subr.bf16.mxu0 %v961_v0  ;;  %706 = vmatprep.subr.bf16.mxu1 %v961_v0 }
  0x5f   :  { %687 = vmatpush3.bf16.msra.mxu0 %v779_v11  ;;  %707 = vmatpush3.bf16.msra.mxu1 %v780_v12 }
  0x60   :  { %688 = vmatprep.subr.bf16.mxu0 %v961_v0  ;;  %708 = vmatprep.subr.bf16.mxu1 %v961_v0 }
  0x63   :  { %689 = vmatpush3.bf16.msra.mxu0 %v781_v13  ;;  %709 = vmatpush3.bf16.msra.mxu1 %v782_v14 }
  0x64   :  { %690 = vmatprep.subr.bf16.mxu0 %v961_v0  ;;  %710 = vmatprep.subr.bf16.mxu1 %v961_v0 }
  0x67   :  { %691 = vmatpush3.bf16.msra.mxu0 %v783_v15  ;;  %711 = vmatpush3.bf16.msra.mxu1 %v784_v16 }
  0x68   :  { %716 = vmatprep.subr.bf16.mxu0 %v961_v0  ;;  %736 = vmatprep.subr.bf16.mxu1 %v961_v0 }
  0x6a   :  { %693 = vmatmul.mubr.bf16.vlgmr.msra.gmra.mxu0 %v785_v17  ;;  %713 = vmatmul.mubr.bf16.vlgmr.msra.gmra.mxu1 %v786_v18 }
  0x6b   :  { %717 = vmatpush3.bf16.msra.mxu0 %v787_v19  ;;  %732 = vmatprep.mubr.msk.bf16.mxu0 %vm962_vm0, %v961_v0 }
  0x6c   :  { %718 = vmatprep.subr.bf16.mxu0 %v961_v0  ;;  %752 = vmatprep.mubr.msk.bf16.mxu1 %vm962_vm0, %v961_v0 }
  0x6d   :  { %737 = vmatpush3.bf16.msra.mxu1 %v795_v27 }
  0x6e   :  { %738 = vmatprep.subr.bf16.mxu1 %v961_v0 }
  0x6f   :  { %719 = vmatpush3.bf16.msra.mxu0 %v788_v20 }
  0x70   :  { %720 = vmatprep.subr.bf16.mxu0 %v961_v0 }
  0x71   :  { %739 = vmatpush3.bf16.msra.mxu1 %v796_v28 }
  0x72   :  { %740 = vmatprep.subr.bf16.mxu1 %v961_v0 }
  0x73   :  { %721 = vmatpush3.bf16.msra.mxu0 %v789_v21 }
  0x74   :  { %722 = vmatprep.subr.bf16.mxu0 %v961_v0 }
  0x75   :  { %741 = vmatpush3.bf16.msra.mxu1 %v797_v29 }
  0x76   :  { %742 = vmatprep.subr.bf16.mxu1 %v961_v0 }
  0x77   :  { %723 = vmatpush3.bf16.msra.mxu0 %v790_v22 }
  0x78   :  { %724 = vmatprep.subr.bf16.mxu0 %v961_v0 }
  0x79   :  { %743 = vmatpush3.bf16.msra.mxu1 %v798_v30 }
  0x7a   :  { %744 = vmatprep.subr.bf16.mxu1 %v961_v0 }
  0x7b   :  { %725 = vmatpush3.bf16.msra.mxu0 %v791_v23 }
  0x7c   :  { %726 = vmatprep.subr.bf16.mxu0 %v961_v0 }
  0x7d   :  { %745 = vmatpush3.bf16.msra.mxu1 %v799_v31 }
  0x7e   :  { %746 = vmatprep.subr.bf16.mxu1 %v961_v0 }
  0x7f   :  { %727 = vmatpush3.bf16.msra.mxu0 %v792_v24 }
  0x80   :  { %728 = vmatprep.subr.bf16.mxu0 %v961_v0 }
  0x81   :  { %747 = vmatpush3.bf16.msra.mxu1 %v800_v48 }
  0x82   :  { %748 = vmatprep.subr.bf16.mxu1 %v961_v0 }
  0x83   :  { %729 = vmatpush3.bf16.msra.mxu0 %v793_v25 }
  0x84   :  { %730 = vmatprep.subr.bf16.mxu0 %v961_v0 }
  0x85   :  { %749 = vmatpush3.bf16.msra.mxu1 %v801_v49 }
  0x86   :  { %750 = vmatprep.subr.bf16.mxu1 %v961_v0 }
  0x87   :  { %731 = vmatpush3.bf16.msra.mxu0 %v794_v26 }
  0x89   :  { %751 = vmatpush3.bf16.msra.mxu1 %v802_v50 }
 0x12a   :  { %v240_v32 = vpop.f32.mrf.mxu0  ;;  %v335_v33 = vpop.f32.mrf.mxu1 }
 0x12b   :  { %v336_v34 = vadd.f32 %v335_v33, %v240_v32 }
 0x12c   :  { %v694_v35 = vpop.f32.mrf.mxu0  ;;  %v714_v37 = vpop.f32.mrf.mxu1 }
 0x12d   :  { %v349_v40 = vadd.f32 %v621_v36, %v336_v34 }
 0x12e   :  { %v243_v38 = vpop.f32.mrf.mxu0  ;;  %v338_v39 = vpop.f32.mrf.mxu1 }
 0x12f   :  { %v339_v41 = vadd.f32 %v338_v39, %v243_v38  ;;  %v351_v45 = vmax.f32 %v349_v40, 0.0 }
 0x130   :  { %v695_v42 = vpop.f32.mrf.mxu0  ;;  %v715_v43 = vpop.f32.mrf.mxu1 }
 0x131   :  { %v350_v44 = vadd.f32 %v621_v36, %v339_v41 }
 0x133   :  { %v352_v46 = vmax.f32 %v350_v44, 0.0 }
 0x135   :  { %v353_v47 = vpack.c.bf16 %v352_v46, %v351_v45 }
 0x137   :  { %733 = vmatmul.mubr.bf16.vlgmr.msra.gmra.mxu0 %v353_v47 }
 0x1f7   :  { %v459_v52 = vpop.f32.mrf.mxu0 }
 0x1f8   :  { %v460_v54 = vadd.f32 %v622_v51, %v459_v52 }
 0x1f9   :  { %v734_v53 = vpop.f32.mrf.mxu0 }
 0x1fa   :  { %v466_v58 = vmax.f32 %v460_v54, 0.0 }
 0x1fb   :  { %v462_v55 = vpop.f32.mrf.mxu0 }
 0x1fc   :  { %v463_v56 = vadd.f32 %v622_v51, %v462_v55 }
 0x1fd   :  { %v735_v57 = vpop.f32.mrf.mxu0 }
 0x1fe   :  { %v467_v59 = vmax.f32 %v463_v56, 0.0 }
 0x200   :  { %v468_v60 = vpack.c.bf16 %v467_v59, %v466_v58 }
 0x202   :  { %753 = vmatmul.mubr.bf16.vlgmr.msra.gmra.mxu1 %v468_v60 }
 0x2c2   :  { %v574_v62 = vpop.f32.mrf.mxu1 }
 0x2c3   :  { %v575_v63 = vadd.f32 %v631_v61, %v574_v62 }
 0x2c4   :  { %v754_v0 = vpop.f32.mrf.mxu1 }
 0x2c5   :  { %581 = vst [vmem:[#allocation13] sm:$0xff] %v575_v63 }
 0x2c6   :  { %v577_v1 = vpop.f32.mrf.mxu1 }
 0x2c7   :  { %v578_v2 = vadd.f32 %v631_v61, %v577_v1 }
 0x2c8   :  { %v755_v3 = vpop.f32.mrf.mxu1 }
 0x2c9   :  { %582 = vst [vmem:[#allocation13 + $0x8] sm:$0xff] %v578_v2 }
 0x2ca   :  { %934 = shalt.err (!%p931_p6)
}
 0x2cb   :  { %s964_s21 = smov 128   ;;  %s965_s8 = smov 8  }
 0x2cc   :  { %594 = dma.vmem_to_hbm [thread:$0]  %s589_s20, 256, %s1113_s9, [#allocation4], %s964_s21, %s964_s21, %s965_s8  }
 0x2cd   :  { %951 = dma.done.wait [#allocation4], 256  }
 0x2ce   :  { %952 = vsyncadd [#allocation4], 4294967040 }
 0x2cf   :  { %598 = vsyncpa [#allocation3], 1 }
 0x2d0   :  { %599 = vsyncpa [#allocation6], 1 }
 0x2d1   :  { %600 = vsyncpa [#allocation9], 1 }
 0x2d2   :  { %601 = vsyncpa [#allocation12], 1 }
 0x2d3   :  { %602 = vsyncpa [#allocation4], 1 }

</bundles_post_ra>
